<compile_context>
chip_gen: v7x
topology: tpu7x:2x2x1
jax: 0.10.0
libtpu: 0.0.40
codegen_flags: <defaults>
</compile_context>

<pallas_src>
import functools

import jax
import jax.numpy as jnp
from jax.experimental import pallas as pl
from jax.experimental.pallas import tpu as pltpu

NUM_LAYERS = 2
HIDDEN = 128            # hidden_size (multiple of 128 -> lane-aligned)
BATCH = 2
SEQ = 8
MAX_TM = 4096           # production row-tile size (multiple of 8)
VMEM_LIMIT_BYTES = 48 * 1024 * 1024   # headroom for TM=4096 tiles on v5e


def _cdiv(a, b):
    return -(-a // b)


def _round_up(a, m):
    return _cdiv(a, m) * m


def _choose_tiling(m, max_tm=MAX_TM):
    """Pick (tm, m_pad) with tm % 8 == 0, m_pad % tm == 0, m_pad >= m, and an
    EVEN grid count (>= 2) so v7x's two TensorCores split the work evenly."""
    n = max(2, _cdiv(m, max_tm))
    if n % 2:
        n += 1
    tm = _round_up(_cdiv(m, n), 8)
    return tm, tm * n


def highway_kernel(x_ref, w_ref, b_ref, o_ref, *, num_layers, hidden):
    # x_ref: (TM, H) bf16;  w_ref: (L, H, 2H) bf16 = [Wt | Wg];
    # b_ref: (L, 1, 2H) f32 = [bt | bg];  o_ref: (TM, H) bf16
    x = x_ref[...].astype(jnp.float32)       # upcast once; elementwise math in f32
    for l in range(num_layers):              # static unroll (small L)
        # One fused N=2H matmul per layer: fills the 256-wide MXU, shares LHS.
        y = jnp.dot(x.astype(jnp.bfloat16), w_ref[l],
                    preferred_element_type=jnp.float32) + b_ref[l]
        t = jnp.maximum(y[:, :hidden], 0.0)                  # relu(transform)
        # sigmoid(z) = 0.5*tanh(0.5*z) + 0.5: one EUP push, no approx rcp.
        g = 0.5 * jnp.tanh(0.5 * y[:, hidden:]) + 0.5
        # dropout(p=0.1, training=False) == identity (eval semantics).
        x = g * (t - x) + x                                  # == g*t + (1-g)*x
    o_ref[...] = x.astype(o_ref.dtype)


def highway_encoder(x, w_packed, b_packed, *, act_dtype=jnp.bfloat16):
    """x: (B, S, H).  w_packed: (L, H, 2H) bf16.  b_packed: (L, 1, 2H) f32.

    Activations cross HBM in `act_dtype` (bf16 by default) -- a deliberate,
    documented precision/bandwidth tradeoff; output dtype == act_dtype.
    """
    B, S, H = x.shape
    L = w_packed.shape[0]
    M = B * S

    tm, m_pad = _choose_tiling(M)
    x2 = x.reshape(M, H).astype(act_dtype)
    if m_pad != M:
        x2 = jnp.pad(x2, ((0, m_pad - M), (0, 0)))   # padded rows discarded below

    kernel = functools.partial(highway_kernel, num_layers=L, hidden=H)

    act_bytes = jnp.dtype(act_dtype).itemsize
    cost = pl.CostEstimate(
        flops=L * 2 * m_pad * H * (2 * H),
        transcendentals=L * m_pad * H,
        bytes_accessed=2 * m_pad * H * act_bytes + w_packed.size * 2 + b_packed.size * 4,
    )

    out = pl.pallas_call(
        kernel,
        out_shape=jax.ShapeDtypeStruct((m_pad, H), act_dtype),
        grid_spec=pltpu.PrefetchScalarGridSpec(
            num_scalar_prefetch=0,
            grid=(m_pad // tm,),
            in_specs=[
                pl.BlockSpec((tm, H), lambda i: (i, 0)),           # x tile (bf16)
                pl.BlockSpec((L, H, 2 * H), lambda i: (0, 0, 0)),  # fused weights (resident)
                pl.BlockSpec((L, 1, 2 * H), lambda i: (0, 0, 0)),  # fused biases (resident)
            ],
            out_specs=pl.BlockSpec((tm, H), lambda i: (i, 0)),
        ),
        compiler_params=pltpu.CompilerParams(
            dimension_semantics=("parallel",),       # even grid -> both v7x TCs busy
            vmem_limit_bytes=VMEM_LIMIT_BYTES,       # v5e default 16 MiB is too small at TM=4096
        ),
        cost_estimate=cost,
    )(x2, w_packed, b_packed)

    return out[:M].reshape(B, S, H)


def init_params(key, num_layers, hidden):
    """Deterministic nn.Linear-style init: U(-1/sqrt(H), 1/sqrt(H))."""
    bound = 1.0 / (hidden ** 0.5)
    keys = jax.random.split(key, 4)
    # stored as (in, out) == W^T relative to torch's (out, in)
    wt = jax.random.uniform(keys[0], (num_layers, hidden, hidden), jnp.float32,
                            minval=-bound, maxval=bound)
    bt = jax.random.uniform(keys[1], (num_layers, 1, hidden), jnp.float32,
                            minval=-bound, maxval=bound)
    wg = jax.random.uniform(keys[2], (num_layers, hidden, hidden), jnp.float32,
                            minval=-bound, maxval=bound)
    bg = jax.random.uniform(keys[3], (num_layers, 1, hidden), jnp.float32,
                            minval=-bound, maxval=bound)
    return wt, bt, wg, bg


def pack_params(wt, bt, wg, bg):
    """Fuse transform/gate projections: W -> (L, H, 2H) bf16, b -> (L, 1, 2H) f32."""
    w = jnp.concatenate([wt, wg], axis=-1).astype(jnp.bfloat16)
    b = jnp.concatenate([bt, bg], axis=-1)
    return w, b


def highway_ref(x, wt, bt, wg, bg):
    """Pure-JAX f32 reference (eval-mode dropout)."""
    L = wt.shape[0]
    for l in range(L):
        t = jnp.maximum(x @ wt[l] + bt[l], 0.0)
        g = jax.nn.sigmoid(x @ wg[l] + bg[l])
        x = g * t + (1.0 - g) * x
    return x


if __name__ == "__main__":
    key = jax.random.PRNGKey(0)
    k_x, k_p = jax.random.split(key)

    x = jax.random.normal(k_x, (BATCH, SEQ, HIDDEN), jnp.float32)
    wt, bt, wg, bg = init_params(k_p, NUM_LAYERS, HIDDEN)
    w_packed, b_packed = pack_params(wt, bt, wg, bg)

    out = highway_encoder(x, w_packed, b_packed)
    out = jax.block_until_ready(out)

    ref = highway_ref(x, wt, bt, wg, bg)
    assert out.shape == x.shape
    out_f32 = out.astype(jnp.float32)
    assert bool(jnp.all(jnp.isfinite(out_f32)))
    # bf16 activations at the HBM boundary + bf16 MXU operands (f32 accumulation)
    # => tolerance loosened relative to the pure-f32 reference.
    max_err = float(jnp.max(jnp.abs(out_f32 - ref)))
    assert jnp.allclose(out_f32, ref, atol=5e-2, rtol=5e-2), f"max abs err {max_err}"

    print("KERNEL_OK")
</pallas_src>

<mosaic_0001>
module attributes {stable_mosaic.version = 11 : i64} {
  func.func @highway_kernel(%arg0: i32, %arg1: memref<8x128xbf16, #tpu.memory_space<vmem>>, %arg2: memref<2x128x256xbf16, #tpu.memory_space<vmem>>, %arg3: memref<2x1x256xf32, #tpu.memory_space<vmem>>, %arg4: memref<8x128xbf16, #tpu.memory_space<vmem>>) attributes {dimension_semantics = [#tpu.dimension_semantics<parallel>], iteration_bounds = array<i64: 2>, scalar_prefetch = 0 : i64, scratch_operands = 0 : i64, tpu.core_type = #tpu.core_type<tc>, window_params = [{transform_indices = @transform_0, window_bounds = array<i64: 8, 128>}, {pipeline_mode = #tpu.pipeline_mode<synchronous>, transform_indices = @transform_1, window_bounds = array<i64: 2, 128, 256>}, {pipeline_mode = #tpu.pipeline_mode<synchronous>, transform_indices = @transform_2, window_bounds = array<i64: 2, 1, 256>}, {transform_indices = @transform_3, window_bounds = array<i64: 8, 128>}]} {
    %c0 = arith.constant 0 : index
    %c0_0 = arith.constant 0 : index
    %0 = vector.load %arg1[%c0, %c0_0] : memref<8x128xbf16, #tpu.memory_space<vmem>>, vector<8x128xbf16>
    %1 = arith.extf %0 : vector<8x128xbf16> to vector<8x128xf32>
    %2 = arith.truncf %1 : vector<8x128xf32> to vector<8x128xbf16>
    %c0_1 = arith.constant 0 : index
    %c0_2 = arith.constant 0 : index
    %c0_3 = arith.constant 0 : index
    %3 = vector.load %arg2[%c0_1, %c0_2, %c0_3] : memref<2x128x256xbf16, #tpu.memory_space<vmem>>, vector<1x128x256xbf16>
    %4 = vector.shape_cast %3 : vector<1x128x256xbf16> to vector<128x256xbf16>
    %cst = arith.constant dense<0.000000e+00> : vector<8x256xf32>
    %5 = tpu.matmul %2, %4, %cst {dimension_numbers = #tpu.dot_dimension_numbers<[1], [0], [0], [1], [0, 0, 1, 1], [], []>} : vector<8x128xbf16>, vector<128x256xbf16>, vector<8x256xf32> -> vector<8x256xf32>
    %c0_4 = arith.constant 0 : index
    %c0_5 = arith.constant 0 : index
    %c0_6 = arith.constant 0 : index
    %6 = vector.load %arg3[%c0_4, %c0_5, %c0_6] : memref<2x1x256xf32, #tpu.memory_space<vmem>>, vector<1x1x256xf32>
    %7 = vector.shape_cast %6 : vector<1x1x256xf32> to vector<1x256xf32>
    %8 = vector.broadcast %7 : vector<1x256xf32> to vector<8x256xf32>
    %9 = arith.addf %5, %8 : vector<8x256xf32>
    %10 = vector.extract_strided_slice %9 {offsets = [0, 0], sizes = [8, 128], strides = [1, 1]} : vector<8x256xf32> to vector<8x128xf32>
    %cst_7 = arith.constant 0.000000e+00 : f32
    %11 = vector.broadcast %cst_7 : f32 to vector<8x128xf32>
    %12 = arith.maximumf %10, %11 : vector<8x128xf32>
    %13 = vector.extract_strided_slice %9 {offsets = [0, 128], sizes = [8, 128], strides = [1, 1]} : vector<8x256xf32> to vector<8x128xf32>
    %cst_8 = arith.constant 5.000000e-01 : f32
    %14 = vector.broadcast %cst_8 : f32 to vector<8x128xf32>
    %15 = arith.mulf %14, %13 : vector<8x128xf32>
    %16 = math.tanh %15 : vector<8x128xf32>
    %cst_9 = arith.constant 5.000000e-01 : f32
    %17 = vector.broadcast %cst_9 : f32 to vector<8x128xf32>
    %18 = arith.mulf %17, %16 : vector<8x128xf32>
    %cst_10 = arith.constant 5.000000e-01 : f32
    %19 = vector.broadcast %cst_10 : f32 to vector<8x128xf32>
    %20 = arith.addf %18, %19 : vector<8x128xf32>
    %21 = arith.subf %12, %1 : vector<8x128xf32>
    %22 = arith.mulf %20, %21 : vector<8x128xf32>
    %23 = arith.addf %22, %1 : vector<8x128xf32>
    %24 = arith.truncf %23 : vector<8x128xf32> to vector<8x128xbf16>
    %c1 = arith.constant 1 : index
    %c0_11 = arith.constant 0 : index
    %c0_12 = arith.constant 0 : index
    %25 = vector.load %arg2[%c1, %c0_11, %c0_12] : memref<2x128x256xbf16, #tpu.memory_space<vmem>>, vector<1x128x256xbf16>
    %26 = vector.shape_cast %25 : vector<1x128x256xbf16> to vector<128x256xbf16>
    %cst_13 = arith.constant dense<0.000000e+00> : vector<8x256xf32>
    %27 = tpu.matmul %24, %26, %cst_13 {dimension_numbers = #tpu.dot_dimension_numbers<[1], [0], [0], [1], [0, 0, 1, 1], [], []>} : vector<8x128xbf16>, vector<128x256xbf16>, vector<8x256xf32> -> vector<8x256xf32>
    %c1_14 = arith.constant 1 : index
    %c0_15 = arith.constant 0 : index
    %c0_16 = arith.constant 0 : index
    %28 = vector.load %arg3[%c1_14, %c0_15, %c0_16] : memref<2x1x256xf32, #tpu.memory_space<vmem>>, vector<1x1x256xf32>
    %29 = vector.shape_cast %28 : vector<1x1x256xf32> to vector<1x256xf32>
    %30 = vector.broadcast %29 : vector<1x256xf32> to vector<8x256xf32>
    %31 = arith.addf %27, %30 : vector<8x256xf32>
    %32 = vector.extract_strided_slice %31 {offsets = [0, 0], sizes = [8, 128], strides = [1, 1]} : vector<8x256xf32> to vector<8x128xf32>
    %cst_17 = arith.constant 0.000000e+00 : f32
    %33 = vector.broadcast %cst_17 : f32 to vector<8x128xf32>
    %34 = arith.maximumf %32, %33 : vector<8x128xf32>
    %35 = vector.extract_strided_slice %31 {offsets = [0, 128], sizes = [8, 128], strides = [1, 1]} : vector<8x256xf32> to vector<8x128xf32>
    %cst_18 = arith.constant 5.000000e-01 : f32
    %36 = vector.broadcast %cst_18 : f32 to vector<8x128xf32>
    %37 = arith.mulf %36, %35 : vector<8x128xf32>
    %38 = math.tanh %37 : vector<8x128xf32>
    %cst_19 = arith.constant 5.000000e-01 : f32
    %39 = vector.broadcast %cst_19 : f32 to vector<8x128xf32>
    %40 = arith.mulf %39, %38 : vector<8x128xf32>
    %cst_20 = arith.constant 5.000000e-01 : f32
    %41 = vector.broadcast %cst_20 : f32 to vector<8x128xf32>
    %42 = arith.addf %40, %41 : vector<8x128xf32>
    %43 = arith.subf %34, %23 : vector<8x128xf32>
    %44 = arith.mulf %42, %43 : vector<8x128xf32>
    %45 = arith.addf %44, %23 : vector<8x128xf32>
    %46 = arith.truncf %45 : vector<8x128xf32> to vector<8x128xbf16>
    %c0_21 = arith.constant 0 : index
    %c0_22 = arith.constant 0 : index
    %47 = vector.load %arg4[%c0_21, %c0_22] : memref<8x128xbf16, #tpu.memory_space<vmem>>, vector<8x128xbf16>
    tpu.vector_store %arg4[%c0_21, %c0_22], %46 {strides = array<i32>} : memref<8x128xbf16, #tpu.memory_space<vmem>>, vector<8x128xbf16>,
    return
  }
  func.func @transform_0(%arg0: i32) -> (i32, i32) {
    %c0_i32 = arith.constant 0 : i32
    %c0_i32_0 = arith.constant 0 : i32
    return %arg0, %c0_i32 : i32, i32
  }
  func.func @transform_1(%arg0: i32) -> (i32, i32, i32) {
    %c0_i32 = arith.constant 0 : i32
    %c0_i32_0 = arith.constant 0 : i32
    %c0_i32_1 = arith.constant 0 : i32
    %c0_i32_2 = arith.constant 0 : i32
    return %c0_i32, %c0_i32_0, %c0_i32_1 : i32, i32, i32
  }
  func.func @transform_2(%arg0: i32) -> (i32, i32, i32) {
    %c0_i32 = arith.constant 0 : i32
    %c0_i32_0 = arith.constant 0 : i32
    %c0_i32_1 = arith.constant 0 : i32
    %c0_i32_2 = arith.constant 0 : i32
    return %c0_i32, %c0_i32_0, %c0_i32_1 : i32, i32, i32
  }
  func.func @transform_3(%arg0: i32) -> (i32, i32) {
    %c0_i32 = arith.constant 0 : i32
    %c0_i32_0 = arith.constant 0 : i32
    return %arg0, %c0_i32 : i32, i32
  }
}

</mosaic_0001>

<bundles_post_ra>
// kernel: tpu_custom_call.1
= control target key start
LH: loop header
LB: loop body
LE: loop exit
PB: predicated region body
PF: predicated region fallthrough
CT: control target
= control target key end

     0   :  { %8 = vsyncpa [#allocation3], 0  ;;  %s1141_s0 = inlined_call_operand.hbm [shape: bf16[16,128], index: 0, kind: input, shape index: {}]   ;;  %s1142_s1 = inlined_call_operand.hbm [shape: bf16[2,128,256], index: 1, kind: input, shape index: {}]   ;;  %s1143_s2 = inlined_call_operand.vmem [shape: f32[2,1,256], index: 2, kind: input, shape index: {}]   ;;  %s1144_s3 = inlined_call_operand.hbm [shape: bf16[16,128], index: 3, kind: output, shape index: {}]  }
   0x1   :  { %10 = vsyncpa [#allocation3 + $0x1], 0 }
   0x2   :  { %11 = vsyncpa [#allocation6], 0 }
   0x3   :  { %12 = vsyncpa [#allocation4], 0 }
   0x4   :  { %14 = vsyncpa [#allocation4 + $0x1], 0  ;;  %s932_s12 = smov 0   ;;  %s934_s13 = smov 0  }
   0x5   :  { %s936_s14 = smov 0   ;;  %s938_s15 = smov 0  }
   0x6 LB: > { %s953_s16 = sadd.s32 4294967295, %s904_s15   ;;  %s617_s17 = sadd.s32 4294967294, %s904_s15   ;;  %s904_s15 = sphi %s938_s15, %s1164_s15   ;;  %s900_s14 = sphi %s936_s14, %s1163_s14   ;;  %s896_s13 = sphi %s934_s13, %s1162_s13   ;;  %s892_s12 = sphi %s932_s12, %s1161_s12  }
   0x7   : > { %p40_p0 = scmp.ne.s32.totalorder %s896_s13, %s892_s12  ;;  %p1145_p1 = scmp.eq.s32.totalorder %s953_s16, 0 }
   0x8   : > { %p112_p3 = scmp.eq.s32.totalorder %s617_s17, 1  ;;  %p618_p5 = scmp.ge.s32.totalorder %s904_s15, 1 }
   0x9   : > { %p962_p4 = por %p1145_p1, %p40_p0  ;;  %p119_p7 = scmp.lt.s32.totalorder %s904_s15, 3 }
   0xa   : > { %p967_p6 = por %p112_p3, %p40_p0  ;;  %s906_s21 = smov [#allocation5]  }
   0xb   : > { %s1148_s18 = scalar_select %p962_p4, 1, 0 }
   0xc   : > { %s1149_s19 = scalar_select %p967_p6, 1, 0 }
   0xd   : > { %p972_p8 = pnand %p618_p5, %p119_p7  ;;  %s131_s22 = sshll.u32 %s906_s21, 4  ;;  %s976_s22 = int_to_ptr.vmem [resolvable:$true] %s131_s22 }
   0xe   : > { %s988_s24 = sadd.s32 1, %s904_s15   ;;  %s27_s25 = sadd.s32 1, %s900_s14 }
   0xf   : > { %s1150_s20 = scalar_select %p972_p8, 1, 0 }
  0x10   : > { %p672_p9 = pneg %p972_p8  ;;  %s24_s26 = ssub.s32 %s904_s15, %s988_s24 }
  0x11   : > { %s776_s29 = scalar_lea.hbm %s1142_s1, 4096 }
  0x12   : > { %p983_p11 = pnand %p672_p9, %p1145_p1  ;;  %p777_p12 = scmp.ne.s32.totalorder %s1142_s1, %s776_s29 }
  0x13   : > { %p783_p5 = scmp.lt.u32.totalorder %s776_s29, %s1142_s1 }
  0x14   : > { %p778_p13 = pneg %p983_p11 }
  0x16   : > { %p779_p0 = pnand %p778_p13, %p777_p12 }
  0x18   : > { %p780_p3 = pneg %p779_p0 }
  0x1a   : > { %p785_p7 = pnand %p783_p5, %p780_p3 }
  0x1c   : > { %788 = shalt.err (!%p785_p7)
}
  0x1d   : > { %s789_s7 = scalar_lea.vmem %s976_s22, 4096  ;;  %p797_p2 = scmp.lt.s32.totalorder %s976_s22, %s976_s22 }
  0x1e   : > { %p790_p9 = scmp.ne.s32.totalorder %s976_s22, %s789_s7  ;;  %p798_p6 = scmp.lt.s32.totalorder %s789_s7, %s789_s7 }
  0x20   : > { %p792_p10 = pnand %p790_p9, %p778_p13  ;;  %p799_p4 = por %p798_p6, %p797_p2 }
  0x22   : > { %p793_p1 = pneg %p792_p10 }
  0x24   : > { %p800_p8 = pnand %p799_p4, %p793_p1 }
  0x26   : > { %803 = shalt.err (!%p800_p8)
}
  0x27   : > { %s907_s8 = smov 128   ;;  %s908_s9 = smov 8  }
  0x28   : > { %675 = dma.hbm_to_vmem [thread:$0]  (!%p983_p11), %s1142_s1, 4096, %s976_s22, [#allocation6], %s907_s8, %s907_s8, %s908_s9  }
  0x29   : > { %p25_p2 = scmp.eq.s32.totalorder %s24_s26, 0  ;;  %p34_p1 = scmp.ne.s32.totalorder %s900_s14, %s896_s13 }
  0x2a   : > { %p35_p4 = scmp.eq.s32.totalorder %s904_s15, 0  ;;  %p685_p6 = scmp.lt.s32.totalorder %s904_s15, 2 }
  0x2b   : > { %s1019_s17 = scalar_select %p25_p2, %s900_s14, %s27_s25  }
  0x2c   : > { %p36_p8 = por %p35_p4, %p34_p1  ;;  %p1152_p10 = scmp.eq.s32.totalorder %s953_s16, 1 }
  0x2d   : > { %s148_s27 = sand.u32 1, %s900_s14   ;;  %s622_s28 = sshll.u32 %s904_s15, 6 }
  0x2e   : > { %p1023_p12 = por %p1152_p10, %p34_p1  ;;  %s621_s29 = sshll.u32 %s148_s27, 2 }
  0x2f   : > { %s1032_s4 = scalar_lea.hbm %s1141_s0, %s622_s28  ;;  %s152_s22 = scalar_lea.vmem [#allocation2], %s621_s29 }
  0x30   : > { %s159_s25 = sshll.u32 %s152_s22, 4  ;;  %p1034_p11 = pnand %p685_p6, %p36_p8  ;;  %s1038_s25 = int_to_ptr.vmem [resolvable:$true] %s159_s25 }
  0x31   : > { %s149_s5 = scalar_lea.sflag [#allocation3], %s148_s27  ;;  %s804_s6 = scalar_lea.hbm %s1032_s4, 64 }
  0x32   : > { %p805_p13 = scmp.ne.s32.totalorder %s1032_s4, %s804_s6  ;;  %p806_p0 = pneg %p1034_p11 }
  0x33   : > { %s809_s9 = scalar_lea.hbm %s1141_s0, 128  ;;  %p810_p7 = scmp.lt.u32.totalorder %s1032_s4, %s1141_s0 }
  0x34   : > { %p807_p3 = pnand %p806_p0, %p805_p13  ;;  %p811_p9 = scmp.lt.u32.totalorder %s809_s9, %s804_s6 }
  0x35   : > { %p813_p1 = scmp.lt.u32.totalorder %s804_s6, %s1032_s4 }
  0x36   : > { %p808_p5 = pneg %p807_p3  ;;  %p812_p2 = por %p811_p9, %p810_p7 }
  0x38   : > { %p814_p4 = por %p813_p1, %p812_p2 }
  0x3a   : > { %p815_p6 = pnand %p814_p4, %p808_p5 }
  0x3c   : > { %818 = shalt.err (!%p815_p6)
}
  0x3d   : > { %s819_s27 = scalar_lea.vmem %s1038_s25, 64  ;;  %s909_s28 = smov [#allocation2]  }
  0x3e   : > { %p820_p8 = scmp.ne.s32.totalorder %s1038_s25, %s819_s27  ;;  %s824_s29 = sshll.u32 %s909_s28, 4  ;;  %s825_s29 = int_to_ptr.vmem [resolvable:$false] %s824_s29 }
  0x3f   : > { %s826_s23 = scalar_lea.vmem %s825_s29, 128  ;;  %p827_p3 = scmp.lt.s32.totalorder %s1038_s25, %s825_s29 }
  0x40   : > { %p822_p10 = pnand %p820_p8, %p806_p0  ;;  %p828_p7 = scmp.lt.s32.totalorder %s826_s23, %s819_s27 }
  0x42   : > { %p823_p13 = pneg %p822_p10  ;;  %p829_p9 = por %p828_p7, %p827_p3 }
  0x44   : > { %p830_p2 = pnand %p829_p9, %p823_p13 }
  0x46   : > { %833 = shalt.err (!%p830_p2)
}
  0x47   : > { %679 = dma.hbm_to_vmem [thread:$0]  (!%p1034_p11), %s1032_s4, 64, %s1038_s25, %s149_s5  }
  0x48   : > { %p1155_p5 = scmp.ne.s32.totalorder %s1150_s20, 0 }
  0x49   : > { %s1068_s30 = sand.u32 (!%p1155_p5), 1, %s896_s13   ;;  %p1156_p0 = scmp.ne.s32.totalorder (!%p1155_p5), %s1148_s18, 0 }
  0x4a   : > { %168 = sbr.rel (%p1155_p5) target bundleno = 609 (0x261), region = 32  ;;  %s624_s22 = sshll.u32 (!%p1155_p5), %s1068_s30, 2 }
  0x4b   : > { %s171_s6 = scalar_lea.sflag (!%p1155_p5), [#allocation3], %s1068_s30  ;;  %s1074_s7 = scalar_lea.vmem (!%p1155_p5), [#allocation2], %s624_s22 }
  0x51   : > { %879 = dma.done.wait (%p1156_p0), %s171_s6, 64  }
  0x52   : > { %881 = vsyncadd (%p1156_p0), %s171_s6, 4294967232  ;;  %p1157_p11 = scmp.eq.s32.totalorder %s953_s16, 0 }
  0x54   : > { %883 = dma.done.wait (%p1157_p11), [#allocation6], 4096   ;;  %p1158_p1 = pmov %p1157_p11 }
  0x55   : > { %v910_v0 = vmov 0   ;;  %v724_v1 = vld [vmem:[#allocation5 + $0x4] ss:$8 sps:$4 sm:$0xff]   ;;  %v726_v2 = vld [vmem:[#allocation5] ss:$8 sps:$4 sm:$0xff]   ;;  %v222_v34 = vlaneseq  ;;  %s661_s26 = sshll.u32 %s953_s16, 6 }
  0x56   : > { %885 = vsyncadd (%p1158_p1), [#allocation6], 4294963200  ;;  %344 = vmatprep.mubr.bf16.mxu0 %v910_v0  ;;  %504 = vmatprep.mubr.bf16.mxu1 %v910_v0  ;;  %v727_v3 = vld [vmem:[#allocation5 + $0x14] ss:$8 sps:$4 sm:$0xff]   ;;  %v729_v4 = vld [vmem:[#allocation5 + $0x10] ss:$8 sps:$4 sm:$0xff]   ;;  %s1097_s11 = scalar_lea.hbm %s1144_s3, %s661_s26 }
  0x57   : > { %312 = vmatprep.subr.bf16.mxu0 %v724_v1  ;;  %v730_v5 = vld [vmem:[#allocation5 + $0x24] ss:$8 sps:$4 sm:$0xff]   ;;  %v732_v6 = vld [vmem:[#allocation5 + $0x20] ss:$8 sps:$4 sm:$0xff]   ;;  %v733_v7 = vld [vmem:[#allocation5 + $0x34] ss:$8 sps:$4 sm:$0xff]  }
  0x58   : > { %313 = vmatpush1.bf16.msra.mxu0 %v726_v2  ;;  %v735_v8 = vld [vmem:[#allocation5 + $0x30] ss:$8 sps:$4 sm:$0xff]   ;;  %v736_v9 = vld [vmem:[#allocation5 + $0x44] ss:$8 sps:$4 sm:$0xff]   ;;  %v750_v11 = vld [vmem:[#allocation5 + $0x80] ss:$8 sps:$4 sm:$0xff]  }
  0x59   : > { %314 = vmatprep.subr.bf16.mxu0 %v727_v3  ;;  %v748_v10 = vld [vmem:[#allocation5 + $0x84] ss:$8 sps:$4 sm:$0xff]   ;;  %v738_v12 = vld [vmem:[#allocation5 + $0x40] ss:$8 sps:$4 sm:$0xff]   ;;  %v751_v13 = vld [vmem:[#allocation5 + $0x94] ss:$8 sps:$4 sm:$0xff]  }
  0x5a   : > { %472 = vmatprep.subr.bf16.mxu1 %v748_v10  ;;  %v739_v14 = vld [vmem:[#allocation5 + $0x54] ss:$8 sps:$4 sm:$0xff]   ;;  %v741_v15 = vld [vmem:[#allocation5 + $0x50] ss:$8 sps:$4 sm:$0xff]   ;;  %v742_v16 = vld [vmem:[#allocation5 + $0x64] ss:$8 sps:$4 sm:$0xff]  }
  0x5b   : > { %473 = vmatpush1.bf16.msra.mxu1 %v750_v11  ;;  %v744_v17 = vld [vmem:[#allocation5 + $0x60] ss:$8 sps:$4 sm:$0xff]   ;;  %v745_v18 = vld [vmem:[#allocation5 + $0x74] ss:$8 sps:$4 sm:$0xff]   ;;  %v747_v19 = vld [vmem:[#allocation5 + $0x70] ss:$8 sps:$4 sm:$0xff]  }
  0x5c   : > { %315 = vmatpush1.bf16.msra.mxu0 %v729_v4  ;;  %474 = vmatprep.subr.bf16.mxu1 %v751_v13  ;;  %v202_v20 = vld [vmem:[%s1074_s7] sm:$0xf]  ;;  %v754_v22 = vld [vmem:[#allocation5 + $0xa4] ss:$8 sps:$4 sm:$0xff]   ;;  %v756_v23 = vld [vmem:[#allocation5 + $0xa0] ss:$8 sps:$4 sm:$0xff]  }
  0x5d   : > { %316 = vmatprep.subr.bf16.mxu0 %v730_v5  ;;  %v753_v21 = vld [vmem:[#allocation5 + $0x90] ss:$8 sps:$4 sm:$0xff]   ;;  %v757_v24 = vld [vmem:[#allocation5 + $0xb4] ss:$8 sps:$4 sm:$0xff]   ;;  %v760_v26 = vld [vmem:[#allocation5 + $0xc4] ss:$8 sps:$4 sm:$0xff]   ;;  %v203_v42 = vunpack.c.l.bf16 %v202_v20 }
  0x5e   : > { %v759_v25 = vld [vmem:[#allocation5 + $0xb0] ss:$8 sps:$4 sm:$0xff]   ;;  %v762_v27 = vld [vmem:[#allocation5 + $0xc0] ss:$8 sps:$4 sm:$0xff]   ;;  %v763_v28 = vld [vmem:[#allocation5 + $0xd4] ss:$8 sps:$4 sm:$0xff]  }
  0x5f   : > { %475 = vmatpush1.bf16.msra.mxu1 %v753_v21  ;;  %v765_v29 = vld [vmem:[#allocation5 + $0xd0] ss:$8 sps:$4 sm:$0xff]   ;;  %v766_v30 = vld [vmem:[#allocation5 + $0xe4] ss:$8 sps:$4 sm:$0xff]   ;;  %v768_v31 = vld [vmem:[#allocation5 + $0xe0] ss:$8 sps:$4 sm:$0xff]  }
  0x60   : > { %317 = vmatpush1.bf16.msra.mxu0 %v732_v6  ;;  %476 = vmatprep.subr.bf16.mxu1 %v754_v22  ;;  %v769_v32 = vld [vmem:[#allocation5 + $0xf4] ss:$8 sps:$4 sm:$0xff]   ;;  %v771_v33 = vld [vmem:[#allocation5 + $0xf0] ss:$8 sps:$4 sm:$0xff]   ;;  %v223_v35 = vshrl.u32 %v222_v34, 7  ;;  %s200_s5 = scalar_lea.vmem [#allocation7], %s624_s22 }
  0x61   : > { %318 = vmatprep.subr.bf16.mxu0 %v733_v7  ;;  %v220_v37 = vld [vmem:[%s1143_s2] sm:$0x3]  ;;  %v643_v57 = vld [vmem:[%s1143_s2 + $0x2] sm:$0x3]  ;;  %s537_s8 = sshll.u32 %s200_s5, 4  ;;  %s524_s27 = scalar_lea.sflag [#allocation4], %s1068_s30  ;;  %s1099_s8 = int_to_ptr.vmem [resolvable:$true] %s537_s8 }
  0x62   : > { %v224_v36 = vsub.s32 0, %v223_v35  ;;  %v228_v38 = vsub.s32 1, %v223_v35  ;;  %s834_s28 = scalar_lea.vmem %s1099_s8, 64  ;;  %s911_s16 = smov [#allocation7]  }
  0x63   : > { %477 = vmatpush1.bf16.msra.mxu1 %v756_v23  ;;  %p835_p4 = scmp.ne.s32.totalorder %s1099_s8, %s834_s28  ;;  %s838_s29 = sshll.u32 %s911_s16, 4  ;;  %s839_s29 = int_to_ptr.vmem [resolvable:$false] %s838_s29 }
  0x64   : > { %319 = vmatpush1.bf16.msra.mxu0 %v735_v8  ;;  %478 = vmatprep.subr.bf16.mxu1 %v757_v24  ;;  %v225_v39 = vrot.slane %v220_v37, %v224_v36  ;;  %v229_v40 = vrot.slane %v220_v37, %v228_v38  ;;  %v389_v58 = vrot.slane %v643_v57, %v228_v38  ;;  %s840_s23 = scalar_lea.vmem %s839_s29, 128  ;;  %p841_p10 = scmp.lt.s32.totalorder %s1099_s8, %s839_s29 }
  0x65   : > { %320 = vmatprep.subr.bf16.mxu0 %v736_v9  ;;  %v385_v1 = vrot.slane %v643_v57, %v224_v36  ;;  %p836_p6 = pnand %p835_p4, %p1023_p12  ;;  %p842_p13 = scmp.lt.s32.totalorder %s840_s23, %s834_s28 }
  0x67   : > { %479 = vmatpush1.bf16.msra.mxu1 %v759_v25  ;;  %p837_p8 = pneg %p836_p6  ;;  %p843_p3 = por %p842_p13, %p841_p10 }
  0x68   : > { %321 = vmatpush1.bf16.msra.mxu0 %v738_v12  ;;  %480 = vmatprep.subr.bf16.mxu1 %v760_v26 }
  0x69   : > { %322 = vmatprep.subr.bf16.mxu0 %v739_v14  ;;  %p844_p7 = pnand %p843_p3, %p837_p8 }
  0x6b   : > { %481 = vmatpush1.bf16.msra.mxu1 %v762_v27 }
  0x6c   : > { %323 = vmatpush1.bf16.msra.mxu0 %v741_v15  ;;  %482 = vmatprep.subr.bf16.mxu1 %v763_v28 }
  0x6d   : > { %324 = vmatprep.subr.bf16.mxu0 %v742_v16 }
  0x6f   : > { %483 = vmatpush1.bf16.msra.mxu1 %v765_v29 }
  0x70   : > { %325 = vmatpush1.bf16.msra.mxu0 %v744_v17  ;;  %484 = vmatprep.subr.bf16.mxu1 %v766_v30 }
  0x71   : > { %326 = vmatprep.subr.bf16.mxu0 %v745_v18 }
  0x73   : > { %485 = vmatpush1.bf16.msra.mxu1 %v768_v31 }
  0x74   : > { %327 = vmatpush1.bf16.msra.mxu0 %v747_v19  ;;  %486 = vmatprep.subr.bf16.mxu1 %v769_v32 }
  0x77   : > { %345 = vmatmul.mubr.bf16.vlgmr.msra.gmra.mrb[0].mxu0 %v202_v20  ;;  %487 = vmatpush1.bf16.msra.mxu1 %v771_v33 }
 0x14a   : > { %v346_v41 = vpop.f32.mrb[0].mxu0 }
 0x14b   : > { %v347_v43 = vadd.f32 %v346_v41, %v225_v39  ;;  %v348_v44 = vpop.f32.mrb[1].mxu0 }
 0x14c   : > { %v349_v45 = vadd.f32 %v348_v44, %v229_v40  ;;  %v350_v46 = vpop.f32.mrb[2].mxu0 }
 0x14d   : > { %v353_v47 = vmax.f32 %v347_v43, 0.0  ;;  %v351_v48 = vpop.f32.mrb[3].mxu0 }
 0x14e   : > { %v354_v49 = vmul.f32 0.5, %v349_v45 }
 0x14f   : > { %v358_v50 = vsub.f32 %v353_v47, %v203_v42 }
 0x150   : > { %772 = vtanh.f32 %v354_v49 }
 0x15a   : > { %v773_v51 = vpop.eup %772 }
 0x15b   : > { %v356_v52 = vmul.f32 0.5, %v773_v51 }
 0x15d   : > { %v357_v53 = vadd.f32 0.5, %v356_v52 }
 0x15f   : > { %v359_v54 = vmul.f32 %v358_v50, %v357_v53 }
 0x161   : > { %v360_v55 = vadd.f32 %v359_v54, %v203_v42 }
 0x163   : > { %v361_v56 = vpack.c.bf16 %v360_v55, %v360_v55 }
 0x165   : > { %505 = vmatmul.mubr.bf16.vlgmr.msra.gmra.mrb[0].mxu1 %v361_v56 }
 0x238   : > { %v506_v59 = vpop.f32.mrb[0].mxu1 }
 0x239   : > { %v508_v60 = vpop.f32.mrb[1].mxu1  ;;  %v507_v2 = vadd.f32 %v506_v59, %v385_v1 }
 0x23a   : > { %v509_v61 = vadd.f32 %v508_v60, %v389_v58  ;;  %v510_v62 = vpop.f32.mrb[2].mxu1 }
 0x23b   : > { %v511_v63 = vpop.f32.mrb[3].mxu1  ;;  %v513_v3 = vmax.f32 %v507_v2, 0.0 }
 0x23c   : > { %v514_v0 = vmul.f32 0.5, %v509_v61 }
 0x23d   : > { %v518_v6 = vsub.f32 %v513_v3, %v360_v55 }
 0x23e   : > { %774 = vtanh.f32 %v514_v0 }
 0x248   : > { %v775_v4 = vpop.eup %774 }
 0x249   : > { %v516_v5 = vmul.f32 0.5, %v775_v4 }
 0x24b   : > { %v517_v7 = vadd.f32 0.5, %v516_v5 }
 0x24d   : > { %v519_v8 = vmul.f32 %v518_v6, %v517_v7 }
 0x24f   : > { %v520_v9 = vadd.f32 %v519_v8, %v360_v55 }
 0x251   : > { %v521_v10 = vpack.c.bf16 %v520_v9, %v520_v9 }
 0x253   : > { %522 = vst [vmem:[%s200_s5] sm:$0xf] %v521_v10 }
 0x254   : > { %847 = shalt.err (!%p844_p7)
}
 0x255   : > { %s848_s30 = scalar_lea.hbm %s1097_s11, 64  ;;  %s852_s7 = scalar_lea.hbm %s1144_s3, 128 }
 0x256   : > { %p849_p9 = scmp.ne.s32.totalorder %s1097_s11, %s848_s30  ;;  %p853_p0 = scmp.lt.u32.totalorder %s1097_s11, %s1144_s3 }
 0x257   : > { %p854_p11 = scmp.lt.u32.totalorder %s852_s7, %s848_s30  ;;  %p856_p4 = scmp.lt.u32.totalorder %s848_s30, %s1097_s11 }
 0x258   : > { %p850_p2 = pnand %p849_p9, %p1023_p12 }
 0x259   : > { %p855_p1 = por %p854_p11, %p853_p0 }
 0x25a   : > { %p851_p5 = pneg %p850_p2 }
 0x25b   : > { %p857_p6 = por %p856_p4, %p855_p1 }
 0x25d   : > { %p858_p8 = pnand %p857_p6, %p851_p5 }
 0x25f   : > { %861 = shalt.err (!%p858_p8)
}
 0x260   : > { %670 = dma.vmem_to_hbm [thread:$0]  (%p1023_p12), %s1099_s8, 64, %s1097_s11, %s524_s27  }
 0x261 PF: > { %s549_s4 = sand.u32 1, %s892_s12   ;;  %p1159_p10 = scmp.ne.s32.totalorder %s1149_s19, 0 }
 0x262   : > { %p1160_p13 = scmp.ge.s32.totalorder %s904_s15, 2  ;;  %s550_s25 = scalar_lea.sflag [#allocation4], %s549_s4 }
 0x264   : > { %p681_p3 = pnand %p1160_p13, %p1159_p10 }
 0x266   : > { %887 = dma.done.wait (!%p681_p3), %s550_s25, 64  }
 0x267   : > { %889 = vsyncadd (!%p681_p3), %s550_s25, 4294967232  ;;  %p17_p7 = scmp.ge.s32.totalorder %s988_s24, 4   ;;  %s1161_s12 = smov %s896_s13 }
 0x268   : > { %s1162_s13 = smov %s900_s14  ;;  %s1163_s14 = smov %s1019_s17 }
 0x269   : > { %s1164_s15 = smov %s988_s24  ;;  %19 = sbr.rel (!%p17_p7) target bundleno = 6 (0x6), region = 83 }
 0x270   :  { %555 = vsyncpa [#allocation3], 1 }
 0x271   :  { %557 = vsyncpa [#allocation3 + $0x1], 1 }
 0x272   :  { %558 = vsyncpa [#allocation6], 1 }
 0x273   :  { %559 = vsyncpa [#allocation4], 1 }
 0x274   :  { %561 = vsyncpa [#allocation4 + $0x1], 1 }

</bundles_post_ra>
